<compile_context>
chip_gen: v7x
topology: tpu7x:2x2x1
jax: 0.10.0
libtpu: 0.0.40
codegen_flags: <defaults>
</compile_context>

<pallas_src>
import functools
import math

import jax
import jax.numpy as jnp
from jax import lax
from jax.experimental import pallas as pl
from jax.experimental.pallas import tpu as pltpu


def _round_up(x: int, m: int) -> int:
    return (x + m - 1) // m * m


def _mlp_kernel(x_ref, w_ref, b_ref, o_ref, h_ref, *, pos_output: bool):
    """One grid step = one (batch tile, layer) pair.

    h_ref is a (2, tm, Dpad) f32 VMEM ping/pong buffer holding the resident
    activation; w_ref/b_ref are this layer's (padded) weight/bias blocks,
    streamed & double-buffered by the BlockSpec pipeline.
    """
    l = pl.program_id(1)
    last = pl.num_programs(1) - 1

    # First layer for this batch tile: stage the (padded) input activation.
    @pl.when(l == 0)
    def _():
        h_ref[0] = x_ref[...].astype(h_ref.dtype)

    slot_in = lax.rem(l, 2)            # ping/pong slot holding this layer's input
    h = h_ref[slot_in]                 # (tm, Dpad) f32

    # MXU: bf16 x bf16 -> f32 accumulate.  Epilogue in f32 on the VPU.
    y = jnp.dot(h.astype(w_ref.dtype), w_ref[...],
                preferred_element_type=jnp.float32)
    y = y + b_ref[...]                 # (tm, Dpad) + (1, Dpad)
    y_act = jnp.maximum(y, 0.0)

    # Next layer's input (dead store on the last layer; harmless).
    h_ref[1 - slot_in] = y_act

    @pl.when(l == last)
    def _():
        o_ref[...] = (y_act if pos_output else y).astype(o_ref.dtype)


def feedforward_dnn(x, params, *, pos_output: bool = False, tm: int = 128,
                    mxu_dtype=jnp.bfloat16):
    """Fused MLP forward: x (B, Din), params = [(W_i (din,dout), b_i (1,dout))]."""
    B, Din = x.shape
    L = len(params)
    out_dim = params[-1][0].shape[1]

    # Common lane-dense feature width (multiple of 128) shared by all layers.
    dmax = max([Din] + [w.shape[1] for w, _ in params])
    Dpad = _round_up(dmax, 128)

    # Batch padded to the M tile; >=128 rows keeps MXU rows busy, stores dense.
    tm = max(8, int(tm))
    Bpad = _round_up(max(B, tm), tm)

    # Stack + zero-pad weights (bf16) and biases (f32).  Zero padding keeps the
    # padded columns identically zero through every Linear+ReLU layer.
    w_all = jnp.zeros((L, Dpad, Dpad), mxu_dtype)
    b_all = jnp.zeros((L, 1, Dpad), jnp.float32)
    for i, (w, b) in enumerate(params):
        di, do = w.shape
        w_all = w_all.at[i, :di, :do].set(w.astype(mxu_dtype))
        b_all = b_all.at[i, 0, :do].set(b.reshape(-1).astype(jnp.float32))

    x_pad = jnp.zeros((Bpad, Dpad), jnp.float32).at[:B, :Din].set(
        x.astype(jnp.float32))

    grid = (Bpad // tm, L)

    # VMEM budget: double-buffered x / W / b / out blocks + ping/pong scratch.
    # TODO(synk): for very large hidden dims (per-layer weight block > VMEM),
    # add N/K tiling inside each layer instead of a full (Dpad, Dpad) block.
    w_item = jnp.dtype(mxu_dtype).itemsize
    needed = (2 * tm * Dpad * 4            # x blocks
              + 2 * Dpad * Dpad * w_item   # weight blocks
              + 2 * Dpad * 4               # bias blocks
              + 2 * tm * Dpad * 4          # out blocks
              + 2 * tm * Dpad * 4)         # activation scratch
    vmem_limit = int(min(max(2 * needed, 32 << 20), 64 << 20))

    flops = 2 * Bpad * Dpad * Dpad * L
    bytes_accessed = (Bpad * Dpad * 4            # x
                      + L * Dpad * Dpad * w_item  # weights
                      + L * Dpad * 4              # biases
                      + Bpad * Dpad * 4)          # out

    out_pad = pl.pallas_call(
        functools.partial(_mlp_kernel, pos_output=pos_output),
        out_shape=jax.ShapeDtypeStruct((Bpad, Dpad), jnp.float32),
        grid_spec=pltpu.PrefetchScalarGridSpec(
            num_scalar_prefetch=0,
            grid=grid,
            in_specs=[
                pl.BlockSpec((tm, Dpad), lambda i, l: (i, 0)),              # x
                pl.BlockSpec((None, Dpad, Dpad), lambda i, l: (l, 0, 0)),   # W_l
                pl.BlockSpec((None, 1, Dpad), lambda i, l: (l, 0, 0)),      # b_l
            ],
            out_specs=pl.BlockSpec((tm, Dpad), lambda i, l: (i, 0)),
            scratch_shapes=[pltpu.VMEM((2, tm, Dpad), jnp.float32)],
        ),
        compiler_params=pltpu.CompilerParams(
            dimension_semantics=("parallel", "arbitrary"),
            vmem_limit_bytes=vmem_limit,
        ),
        cost_estimate=pl.CostEstimate(
            flops=flops, transcendentals=0, bytes_accessed=bytes_accessed),
    )(x_pad, w_all, b_all)

    return out_pad[:B, :out_dim]


def init_feedforward_params(key, input_dim, hidden_dim, n_layers, output_dim,
                            dtype=jnp.float32):
    """Deterministic init mirroring nn.Linear's U(-1/sqrt(fan_in), +1/sqrt(fan_in))."""
    dims = [input_dim] + [hidden_dim] * (n_layers + 1) + [output_dim]
    params = []
    for din, dout in zip(dims[:-1], dims[1:]):
        key, kw, kb = jax.random.split(key, 3)
        bound = 1.0 / math.sqrt(din)
        w = jax.random.uniform(kw, (din, dout), dtype, minval=-bound, maxval=bound)
        b = jax.random.uniform(kb, (1, dout), dtype, minval=-bound, maxval=bound)
        params.append((w, b))
    return params


def feedforward_ref(x, params, *, pos_output: bool = False):
    """Pure-JAX f32 reference (matches the PyTorch module)."""
    h = x
    n = len(params)
    for idx, (w, b) in enumerate(params):
        h = h @ w + b.reshape(1, -1)
        if idx < n - 1 or pos_output:
            h = jnp.maximum(h, 0.0)
    return h


if __name__ == "__main__":
    # Small shapes consistent with the module: batch=8, input_dim=16,
    # hidden_dim=32, n_layers=2 hidden layers, output_dim=8.
    batch, input_dim, hidden_dim, n_layers, output_dim = 8, 16, 32, 2, 8

    key = jax.random.PRNGKey(0)
    key, kx = jax.random.split(key)
    x = jax.random.normal(kx, (batch, input_dim), dtype=jnp.float32)
    params = init_feedforward_params(key, input_dim, hidden_dim, n_layers,
                                     output_dim)

    out = feedforward_dnn(x, params, pos_output=False)
    out = jax.block_until_ready(out)

    assert out.shape == (batch, output_dim), out.shape
    assert bool(jnp.all(jnp.isfinite(out)))

    ref = feedforward_ref(x, params, pos_output=False)
    max_err = float(jnp.max(jnp.abs(out - ref)))
    assert max_err < 5e-2, f"max |err| = {max_err}"

    print("KERNEL_OK")
</pallas_src>

<mosaic_0001>
module attributes {stable_mosaic.version = 11 : i64} {
  func.func @_mlp_kernel(%arg0: i32, %arg1: i32, %arg2: memref<128x128xf32, #tpu.memory_space<vmem>>, %arg3: memref<1x128x128xbf16, #tpu.memory_space<vmem>>, %arg4: memref<1x1x128xf32, #tpu.memory_space<vmem>>, %arg5: memref<128x128xf32, #tpu.memory_space<vmem>>, %arg6: memref<2x128x128xf32, #tpu.memory_space<vmem>>) attributes {dimension_semantics = [#tpu.dimension_semantics<parallel>, #tpu.dimension_semantics<arbitrary>], iteration_bounds = array<i64: 1, 4>, scalar_prefetch = 0 : i64, scratch_operands = 1 : i64, tpu.core_type = #tpu.core_type<tc>, window_params = [{transform_indices = @transform_0, window_bounds = array<i64: 128, 128>}, {transform_indices = @transform_1, window_bounds = array<i64: 1, 128, 128>}, {transform_indices = @transform_2, window_bounds = array<i64: 1, 1, 128>}, {transform_indices = @transform_3, window_bounds = array<i64: 128, 128>}]} {
    %c0_i32 = arith.constant 0 : i32
    %0 = arith.cmpi eq, %arg1, %c0_i32 : i32
    %1 = arith.extui %0 : i1 to i32
    %c0_i32_0 = arith.constant 0 : i32
    %2 = arith.cmpi ne, %1, %c0_i32_0 : i32
    scf.if %2 {
      %c0_12 = arith.constant 0 : index
      %c0_13 = arith.constant 0 : index
      %25 = vector.load %arg2[%c0_12, %c0_13] : memref<128x128xf32, #tpu.memory_space<vmem>>, vector<128x128xf32>
      %c0_14 = arith.constant 0 : index
      %c0_15 = arith.constant 0 : index
      %c0_16 = arith.constant 0 : index
      %26 = vector.load %arg6[%c0_14, %c0_15, %c0_16] : memref<2x128x128xf32, #tpu.memory_space<vmem>>, vector<1x128x128xf32>
      %27 = vector.shape_cast %26 : vector<1x128x128xf32> to vector<128x128xf32>
      %28 = vector.shape_cast %25 : vector<128x128xf32> to vector<1x128x128xf32>
      tpu.vector_store %arg6[%c0_14, %c0_15, %c0_16], %28 {strides = array<i32>} : memref<2x128x128xf32, #tpu.memory_space<vmem>>, vector<1x128x128xf32>,
    } else {
    }
    %c2_i32 = arith.constant 2 : i32
    %3 = arith.remsi %arg1, %c2_i32 : i32
    %4 = arith.index_cast %3 : i32 to index
    %c0 = arith.constant 0 : index
    %c0_1 = arith.constant 0 : index
    %5 = vector.load %arg6[%4, %c0, %c0_1] : memref<2x128x128xf32, #tpu.memory_space<vmem>>, vector<1x128x128xf32>
    %6 = vector.shape_cast %5 : vector<1x128x128xf32> to vector<128x128xf32>
    %7 = arith.truncf %6 : vector<128x128xf32> to vector<128x128xbf16>
    %c0_2 = arith.constant 0 : index
    %c0_3 = arith.constant 0 : index
    %c0_4 = arith.constant 0 : index
    %8 = vector.load %arg3[%c0_2, %c0_3, %c0_4] : memref<1x128x128xbf16, #tpu.memory_space<vmem>>, vector<1x128x128xbf16>
    %9 = vector.shape_cast %8 : vector<1x128x128xbf16> to vector<128x128xbf16>
    %cst = arith.constant dense<0.000000e+00> : vector<128x128xf32>
    %10 = tpu.matmul %7, %9, %cst {dimension_numbers = #tpu.dot_dimension_numbers<[1], [0], [0], [1], [0, 0, 1, 1], [], []>} : vector<128x128xbf16>, vector<128x128xbf16>, vector<128x128xf32> -> vector<128x128xf32>
    %c0_5 = arith.constant 0 : index
    %c0_6 = arith.constant 0 : index
    %c0_7 = arith.constant 0 : index
    %11 = vector.load %arg4[%c0_5, %c0_6, %c0_7] : memref<1x1x128xf32, #tpu.memory_space<vmem>>, vector<1x1x128xf32>
    %12 = vector.shape_cast %11 : vector<1x1x128xf32> to vector<1x128xf32>
    %13 = vector.broadcast %12 : vector<1x128xf32> to vector<128x128xf32>
    %14 = arith.addf %10, %13 : vector<128x128xf32>
    %cst_8 = arith.constant 0.000000e+00 : f32
    %15 = vector.broadcast %cst_8 : f32 to vector<128x128xf32>
    %16 = arith.maximumf %14, %15 : vector<128x128xf32>
    %c1_i32 = arith.constant 1 : i32
    %17 = arith.subi %c1_i32, %3 : i32
    %18 = arith.index_cast %17 : i32 to index
    %c0_9 = arith.constant 0 : index
    %c0_10 = arith.constant 0 : index
    %19 = vector.load %arg6[%18, %c0_9, %c0_10] : memref<2x128x128xf32, #tpu.memory_space<vmem>>, vector<1x128x128xf32>
    %20 = vector.shape_cast %19 : vector<1x128x128xf32> to vector<128x128xf32>
    %21 = vector.shape_cast %16 : vector<128x128xf32> to vector<1x128x128xf32>
    tpu.vector_store %arg6[%18, %c0_9, %c0_10], %21 {strides = array<i32>} : memref<2x128x128xf32, #tpu.memory_space<vmem>>, vector<1x128x128xf32>,
    %c3_i32 = arith.constant 3 : i32
    %22 = arith.cmpi eq, %arg1, %c3_i32 : i32
    %23 = arith.extui %22 : i1 to i32
    %c0_i32_11 = arith.constant 0 : i32
    %24 = arith.cmpi ne, %23, %c0_i32_11 : i32
    scf.if %24 {
      %c0_12 = arith.constant 0 : index
      %c0_13 = arith.constant 0 : index
      %25 = vector.load %arg5[%c0_12, %c0_13] : memref<128x128xf32, #tpu.memory_space<vmem>>, vector<128x128xf32>
      tpu.vector_store %arg5[%c0_12, %c0_13], %14 {strides = array<i32>} : memref<128x128xf32, #tpu.memory_space<vmem>>, vector<128x128xf32>,
    } else {
    }
    return
  }
  func.func @transform_0(%arg0: i32, %arg1: i32) -> (i32, i32) {
    %c0_i32 = arith.constant 0 : i32
    %c0_i32_0 = arith.constant 0 : i32
    return %arg0, %c0_i32 : i32, i32
  }
  func.func @transform_1(%arg0: i32, %arg1: i32) -> (i32, i32, i32) {
    %c0_i32 = arith.constant 0 : i32
    %c0_i32_0 = arith.constant 0 : i32
    %c0_i32_1 = arith.constant 0 : i32
    return %arg1, %c0_i32, %c0_i32_0 : i32, i32, i32
  }
  func.func @transform_2(%arg0: i32, %arg1: i32) -> (i32, i32, i32) {
    %c0_i32 = arith.constant 0 : i32
    %c0_i32_0 = arith.constant 0 : i32
    %c0_i32_1 = arith.constant 0 : i32
    return %arg1, %c0_i32, %c0_i32_0 : i32, i32, i32
  }
  func.func @transform_3(%arg0: i32, %arg1: i32) -> (i32, i32) {
    %c0_i32 = arith.constant 0 : i32
    %c0_i32_0 = arith.constant 0 : i32
    return %arg0, %c0_i32 : i32, i32
  }
}

</mosaic_0001>

<bundles_post_ra>
// kernel: tpu_custom_call.1
= control target key start
LH: loop header
LB: loop body
LE: loop exit
PB: predicated region body
PF: predicated region fallthrough
CT: control target
= control target key end

     0   :  { %8 = vsyncpa [#allocation4], 0  ;;  %s1245_s0 = inlined_call_operand.hbm [shape: f32[128,128], index: 0, kind: input, shape index: {}]   ;;  %s1246_s1 = inlined_call_operand.hbm [shape: bf16[4,128,128], index: 1, kind: input, shape index: {}]   ;;  %s1247_s2 = inlined_call_operand.vmem [shape: f32[4,1,128], index: 2, kind: input, shape index: {}]   ;;  %s1248_s3 = inlined_call_operand.hbm [shape: f32[128,128], index: 3, kind: output, shape index: {}]  }
   0x1   :  { %9 = vsyncpa [#allocation7], 0 }
   0x2   :  { %11 = vsyncpa [#allocation7 + $0x1], 0 }
   0x3   :  { %12 = vsyncpa [#allocation5], 0  ;;  %s978_s12 = smov 0   ;;  %s980_s13 = smov 0  }
   0x4   :  { %s982_s14 = smov 0   ;;  %s984_s15 = smov 0  }
   0x5   :  { %s986_s16 = smov 0   ;;  %s988_s17 = smov 0  }
   0x6 LB: > { %s625_s18 = sadd.s32 4294967295, %s947_s17   ;;  %p76_p0 = scmp.ne.s32.totalorder %s931_s13, %s927_s12  ;;  %s947_s17 = sphi %s988_s17, %s18_s17   ;;  %s943_s16 = sphi %s986_s16, %s1266_s16   ;;  %s939_s15 = sphi %s984_s15, %s1265_s15   ;;  %s935_s14 = sphi %s982_s14, %s1264_s14   ;;  %s931_s13 = sphi %s980_s13, %s1263_s13   ;;  %s927_s12 = sphi %s978_s12, %s1262_s12  }
   0x7   : > { %p1010_p1 = scmp.eq.s32.totalorder %s625_s18, 0  ;;  %p626_p2 = scmp.ge.s32.totalorder %s947_s17, 1 }
   0x8   : > { %p139_p3 = scmp.lt.s32.totalorder %s947_s17, 5  ;;  %s949_s22 = smov [#allocation3]  }
   0x9   : > { %s1253_s19 = scalar_select %p1010_p1, 1, 0 }
   0xa   : > { %p1018_p4 = por %p1010_p1, %p76_p0  ;;  %p1022_p5 = pnand %p626_p2, %p139_p3 }
   0xb   : > { %s154_s23 = sshll.u32 %s949_s22, 4  ;;  %s27_s25 = sadd.s32 1, %s943_s16  ;;  %s155_s23 = int_to_ptr.vmem [resolvable:$true] %s154_s23 }
   0xc   : > { %s1254_s20 = scalar_select %p1018_p4, 1, 0 }
   0xd   : > { %s1255_s21 = scalar_select %p1022_p5, 1, 0 }
   0xe   : > { %p728_p6 = pneg %p1022_p5  ;;  %s805_s28 = scalar_lea.hbm %s1245_s0, 2048 }
   0xf   : > { %p806_p8 = scmp.ne.s32.totalorder %s1245_s0, %s805_s28  ;;  %p812_p12 = scmp.lt.u32.totalorder %s805_s28, %s1245_s0 }
  0x10   : > { %p1030_p7 = pnand %p728_p6, %p1010_p1 }
  0x12   : > { %p807_p9 = pneg %p1030_p7 }
  0x14   : > { %p808_p10 = pnand %p807_p9, %p806_p8 }
  0x16   : > { %p809_p11 = pneg %p808_p10 }
  0x18   : > { %p814_p13 = pnand %p812_p12, %p809_p11 }
  0x1a   : > { %817 = shalt.err (!%p814_p13)
}
  0x1b   : > { %s818_s6 = scalar_lea.vmem %s155_s23, 2048  ;;  %p826_p6 = scmp.lt.s32.totalorder %s155_s23, %s155_s23 }
  0x1c   : > { %p819_p0 = scmp.ne.s32.totalorder %s155_s23, %s818_s6  ;;  %p827_p4 = scmp.lt.s32.totalorder %s818_s6, %s818_s6 }
  0x1e   : > { %p821_p2 = pnand %p819_p0, %p807_p9  ;;  %p828_p1 = por %p827_p4, %p826_p6 }
  0x20   : > { %p822_p3 = pneg %p821_p2 }
  0x22   : > { %p829_p5 = pnand %p828_p1, %p822_p3 }
  0x24   : > { %832 = shalt.err (!%p829_p5)
}
  0x25   : > { %s950_s7 = smov 128   ;;  %s951_s8 = smov 8  }
  0x26   : > { %731 = dma.hbm_to_vmem [thread:$0]  (!%p1030_p7), %s1245_s0, 2048, %s155_s23, [#allocation4], %s950_s7, %s950_s7, %s951_s8  }
  0x27   : > { %p28_p4 = scmp.ge.s32.totalorder %s27_s25, 4  ;;  %s63_s11 = sadd.s32 1, %s935_s14 }
  0x28   : > { %p70_p1 = scmp.ne.s32.totalorder %s935_s14, %s931_s13  ;;  %p71_p5 = scmp.eq.s32.totalorder %s947_s17, 0 }
  0x29   : > { %s1268_s25 = smov (%p28_p4, %s27_s25), 0  ;;  %p737_p9 = scmp.lt.s32.totalorder %s947_s17, 4 }
  0x2a   : > { %p72_p8 = por %p71_p5, %p70_p1  ;;  %s60_s12 = ssub.s32 %s943_s16, %s1268_s25 }
  0x2b   : > { %s168_s22 = sand.u32 1, %s935_s14   ;;  %p61_p10 = scmp.eq.s32.totalorder %s60_s12, 0 }
  0x2c   : > { %s629_s26 = sshll.u32 %s168_s22, 6  ;;  %s653_s27 = sshll.u32 %s943_s16, 10 }
  0x2d   : > { %s1063_s28 = scalar_select %p61_p10, %s935_s14, %s63_s11  }
  0x2e   : > { %s1068_s23 = scalar_lea.hbm %s1246_s1, %s653_s27  ;;  %s172_s30 = scalar_lea.vmem [#allocation6], %s629_s26 }
  0x2f   : > { %s179_s4 = sshll.u32 %s172_s30, 4  ;;  %p1070_p7 = pnand %p737_p9, %p72_p8  ;;  %s1074_s4 = int_to_ptr.vmem [resolvable:$true] %s179_s4 }
  0x30   : > { %s1076_s6 = scalar_lea.sflag [#allocation7], %s168_s22  ;;  %s833_s7 = scalar_lea.hbm %s1068_s23, 1024 }
  0x31   : > { %p834_p11 = scmp.ne.s32.totalorder %s1068_s23, %s833_s7  ;;  %p835_p12 = pneg %p1070_p7 }
  0x32   : > { %s838_s10 = scalar_lea.hbm %s1246_s1, 4096  ;;  %p839_p2 = scmp.lt.u32.totalorder %s1068_s23, %s1246_s1 }
  0x33   : > { %p836_p13 = pnand %p835_p12, %p834_p11  ;;  %p840_p3 = scmp.lt.u32.totalorder %s838_s10, %s833_s7 }
  0x34   : > { %p842_p4 = scmp.lt.u32.totalorder %s833_s7, %s1068_s23 }
  0x35   : > { %p837_p0 = pneg %p836_p13  ;;  %p841_p6 = por %p840_p3, %p839_p2 }
  0x37   : > { %p843_p1 = por %p842_p4, %p841_p6 }
  0x39   : > { %p844_p5 = pnand %p843_p1, %p837_p0 }
  0x3b   : > { %847 = shalt.err (!%p844_p5)
}
  0x3c   : > { %s848_s22 = scalar_lea.vmem %s1074_s4, 1024  ;;  %s952_s26 = smov [#allocation6]  }
  0x3d   : > { %p849_p8 = scmp.ne.s32.totalorder %s1074_s4, %s848_s22  ;;  %s853_s27 = sshll.u32 %s952_s26, 4  ;;  %s854_s27 = int_to_ptr.vmem [resolvable:$false] %s853_s27 }
  0x3e   : > { %s855_s24 = scalar_lea.vmem %s854_s27, 2048  ;;  %p856_p11 = scmp.lt.s32.totalorder %s1074_s4, %s854_s27 }
  0x3f   : > { %p851_p9 = pnand %p849_p8, %p835_p12  ;;  %p857_p13 = scmp.lt.s32.totalorder %s855_s24, %s848_s22 }
  0x41   : > { %p852_p10 = pneg %p851_p9  ;;  %p858_p2 = por %p857_p13, %p856_p11 }
  0x43   : > { %p859_p3 = pnand %p858_p2, %p852_p10 }
  0x45   : > { %862 = shalt.err (!%p859_p3)
}
  0x46   : > { %s953_s29 = smov 64   ;;  %s954_s30 = smov 4  }
  0x47   : > { %735 = dma.hbm_to_vmem [thread:$0]  (!%p1070_p7), %s1068_s23, 1024, %s1074_s4, %s1076_s6, %s953_s29, %s953_s29, %s954_s30  }
  0x48   : > { %p1258_p12 = scmp.ne.s32.totalorder %s1255_s21, 0 }
  0x49   : > { %p1259_p0 = scmp.ne.s32.totalorder (!%p1258_p12), %s1253_s19, 0 }
  0x4a   : > { %197 = sbr.rel (%p1258_p12) target bundleno = 386 (0x182), region = 32 }
  0x51   : > { %914 = dma.done.wait (%p1259_p0), [#allocation4], 2048  }
  0x52   : > { %916 = vsyncadd (%p1259_p0), [#allocation4], 4294965248  ;;  %s203_s7 = sand.u32 1, %s931_s13   ;;  %p1260_p6 = scmp.ne.s32.totalorder %s1254_s20, 0 }
  0x53   : > { %s634_s8 = sshll.u32 %s203_s7, 6  ;;  %s204_s9 = scalar_lea.sflag [#allocation7], %s203_s7 }
  0x54   : > { %s1111_s10 = scalar_lea.vmem [#allocation6], %s634_s8 }
  0x55   : > { %918 = dma.done.wait (%p1260_p6), %s204_s9, 1024  }
  0x56   : > { %920 = vsyncadd (%p1260_p6), %s204_s9, 4294966272  ;;  %p229_p7 = scmp.lt.s32.totalorder %s939_s15, 3  ;;  %p635_p4 = scmp.ne.s32.totalorder %s939_s15, 0 }
  0x57   : > { %v238_v0 = vld [vmem:[#allocation3] sm:$0xff] (!%p635_p4)  ;;  %v239_v1 = vld [vmem:[#allocation3 + $0x8] sm:$0xff] (!%p635_p4)  ;;  %v240_v2 = vld [vmem:[#allocation3 + $0x10] sm:$0xff] (!%p635_p4) }
  0x58   : > { %s1119_s21 = scalar_select %p229_p7, %s939_s15, 3 }
  0x59   : > { %237 = sbr.rel (%p635_p4) target bundleno = 97 (0x61), region = 44  ;;  %254 = vst [vmem:[#allocation2] sm:$0xff] (!%p635_p4), %v238_v0  ;;  %255 = vst [vmem:[#allocation2 + $0x8] sm:$0xff] (!%p635_p4), %v239_v1  ;;  %v241_v3 = vld [vmem:[#allocation3 + $0x18] sm:$0xff] (!%p635_p4)  ;;  %v242_v4 = vld [vmem:[#allocation3 + $0x20] sm:$0xff] (!%p635_p4) }
  0x5a   : > { %s231_s4 = scalar_lea.vmem %s1247_s2, %s1119_s21  ;;  %256 = vst [vmem:[#allocation2 + $0x10] sm:$0xff] (!%p635_p4), %v240_v2  ;;  %v243_v5 = vld [vmem:[#allocation3 + $0x28] sm:$0xff] (!%p635_p4)  ;;  %257 = vst [vmem:[#allocation2 + $0x18] sm:$0xff] (!%p635_p4), %v241_v3  ;;  %v244_v6 = vld [vmem:[#allocation3 + $0x30] sm:$0xff] (!%p635_p4) }
  0x5b   : > { %258 = vst [vmem:[#allocation2 + $0x20] sm:$0xff] (!%p635_p4), %v242_v4  ;;  %259 = vst [vmem:[#allocation2 + $0x28] sm:$0xff] (!%p635_p4), %v243_v5  ;;  %v245_v7 = vld [vmem:[#allocation3 + $0x38] sm:$0xff] (!%p635_p4)  ;;  %v246_v8 = vld [vmem:[#allocation3 + $0x40] sm:$0xff] (!%p635_p4) }
  0x5c   : > { %260 = vst [vmem:[#allocation2 + $0x30] sm:$0xff] (!%p635_p4), %v244_v6  ;;  %261 = vst [vmem:[#allocation2 + $0x38] sm:$0xff] (!%p635_p4), %v245_v7  ;;  %v247_v9 = vld [vmem:[#allocation3 + $0x48] sm:$0xff] (!%p635_p4)  ;;  %v248_v10 = vld [vmem:[#allocation3 + $0x50] sm:$0xff] (!%p635_p4) }
  0x5d   : > { %262 = vst [vmem:[#allocation2 + $0x40] sm:$0xff] (!%p635_p4), %v246_v8  ;;  %v249_v11 = vld [vmem:[#allocation3 + $0x58] sm:$0xff] (!%p635_p4)  ;;  %263 = vst [vmem:[#allocation2 + $0x48] sm:$0xff] (!%p635_p4), %v247_v9  ;;  %v250_v12 = vld [vmem:[#allocation3 + $0x60] sm:$0xff] (!%p635_p4) }
  0x5e   : > { %264 = vst [vmem:[#allocation2 + $0x50] sm:$0xff] (!%p635_p4), %v248_v10  ;;  %265 = vst [vmem:[#allocation2 + $0x58] sm:$0xff] (!%p635_p4), %v249_v11  ;;  %v251_v13 = vld [vmem:[#allocation3 + $0x68] sm:$0xff] (!%p635_p4)  ;;  %v252_v14 = vld [vmem:[#allocation3 + $0x70] sm:$0xff] (!%p635_p4) }
  0x5f   : > { %266 = vst [vmem:[#allocation2 + $0x60] sm:$0xff] (!%p635_p4), %v250_v12  ;;  %267 = vst [vmem:[#allocation2 + $0x68] sm:$0xff] (!%p635_p4), %v251_v13  ;;  %v253_v15 = vld [vmem:[#allocation3 + $0x78] sm:$0xff] (!%p635_p4) }
  0x60   : > { %268 = vst [vmem:[#allocation2 + $0x70] sm:$0xff] %v252_v14  ;;  %269 = vst [vmem:[#allocation2 + $0x78] sm:$0xff] %v253_v15 }
  0x61 PF: > { %v797_v16 = vld [vmem:[%s1111_s10] sm:$0xff]   ;;  %p270_p1 = scmp.lt.s32.totalorder %s939_s15, 0  ;;  %v798_v17 = vld [vmem:[%s1111_s10 + $0x8] sm:$0xff]   ;;  %s271_s20 = ssub.s32 0, %s939_s15  ;;  %v799_v18 = vld [vmem:[%s1111_s10 + $0x10] sm:$0xff]  }
  0x62   : > { %670 = vmatprep.subr.bf16.mxu0 %v797_v16  ;;  %702 = vmatprep.subr.bf16.mxu1 %v797_v16  ;;  %s636_s5 = smin.u32 %s939_s15, %s271_s20  ;;  %v800_v19 = vld [vmem:[%s1111_s10 + $0x18] sm:$0xff]   ;;  %v801_v26 = vld [vmem:[%s1111_s10 + $0x20] sm:$0xff]   ;;  %v802_v27 = vld [vmem:[%s1111_s10 + $0x28] sm:$0xff]   ;;  %p648_p5 = scmp.ne.s32.totalorder %s939_s15, 3 }
  0x63   : > { %671 = vmatpush3.bf16.msra.mxu0 %v797_v16  ;;  %710 = vmatpush3.bf16.msra.mxu1 %v797_v16  ;;  %s273_s6 = sand.u32 1, %s636_s5   ;;  %v803_v28 = vld [vmem:[%s1111_s10 + $0x30] sm:$0xff]   ;;  %v804_v29 = vld [vmem:[%s1111_s10 + $0x38] sm:$0xff]   ;;  %v638_v48 = vld [vmem:[%s231_s4] ss:$0 sm:$0xff] }
  0x64   : > { %672 = vmatprep.subr.bf16.mxu0 %v798_v17  ;;  %703 = vmatprep.subr.bf16.mxu1 %v798_v17  ;;  %s274_s11 = ssub.s32 0, %s273_s6 }
  0x65   : > { %s1270_s11 = smov (!%p270_p1, %s274_s11), %s273_s6 }
  0x66   : > { %s637_s12 = sshll.u32 %s1270_s11, 7  ;;  %s486_s26 = ssub.s32 1, %s1270_s11 }
  0x67   : > { %673 = vmatpush3.bf16.msra.mxu0 %v798_v17  ;;  %711 = vmatpush3.bf16.msra.mxu1 %v798_v17  ;;  %s1136_s22 = scalar_lea.vmem [#allocation2], %s637_s12  ;;  %s647_s29 = sshll.u32 %s486_s26, 7 }
  0x68   : > { %674 = vmatprep.subr.bf16.mxu0 %v799_v18  ;;  %704 = vmatprep.subr.bf16.mxu1 %v799_v18  ;;  %v278_v20 = vld [vmem:[%s1136_s22] sm:$0xff]  ;;  %v279_v21 = vld [vmem:[%s1136_s22 + $0x8] sm:$0xff]  ;;  %v280_v30 = vld [vmem:[%s1136_s22 + $0x10] sm:$0xff]  ;;  %s1175_s30 = scalar_lea.vmem [#allocation2], %s647_s29 }
  0x69   : > { %v286_v22 = vld [vmem:[%s1136_s22 + $0x40] sm:$0xff]  ;;  %v294_v23 = vpack.c.bf16 %v279_v21, %v278_v20  ;;  %v287_v24 = vld [vmem:[%s1136_s22 + $0x48] sm:$0xff]  ;;  %v281_v31 = vld [vmem:[%s1136_s22 + $0x18] sm:$0xff] }
  0x6a   : > { %v298_v25 = vpack.c.bf16 %v287_v24, %v286_v22  ;;  %v288_v32 = vld [vmem:[%s1136_s22 + $0x50] sm:$0xff]  ;;  %v289_v33 = vld [vmem:[%s1136_s22 + $0x58] sm:$0xff]  ;;  %v282_v34 = vld [vmem:[%s1136_s22 + $0x20] sm:$0xff]  ;;  %v295_v38 = vpack.c.bf16 %v281_v31, %v280_v30 }
  0x6b   : > { %675 = vmatpush3.bf16.msra.mxu0 %v799_v18  ;;  %712 = vmatpush3.bf16.msra.mxu1 %v799_v18  ;;  %v283_v35 = vld [vmem:[%s1136_s22 + $0x28] sm:$0xff]  ;;  %v290_v36 = vld [vmem:[%s1136_s22 + $0x60] sm:$0xff]  ;;  %v299_v39 = vpack.c.bf16 %v289_v33, %v288_v32  ;;  %v284_v42 = vld [vmem:[%s1136_s22 + $0x30] sm:$0xff] }
  0x6c   : > { %676 = vmatprep.subr.bf16.mxu0 %v800_v19  ;;  %705 = vmatprep.subr.bf16.mxu1 %v800_v19  ;;  %v291_v37 = vld [vmem:[%s1136_s22 + $0x68] sm:$0xff]  ;;  %v296_v40 = vpack.c.bf16 %v283_v35, %v282_v34  ;;  %v285_v43 = vld [vmem:[%s1136_s22 + $0x38] sm:$0xff]  ;;  %v292_v44 = vld [vmem:[%s1136_s22 + $0x70] sm:$0xff] }
  0x6d   : > { %686 = vmatprep.mubr.bf16.mxu0 %v294_v23  ;;  %694 = vmatprep.mubr.bf16.mxu1 %v298_v25  ;;  %v300_v41 = vpack.c.bf16 %v291_v37, %v290_v36  ;;  %v293_v45 = vld [vmem:[%s1136_s22 + $0x78] sm:$0xff]  ;;  %v297_v46 = vpack.c.bf16 %v285_v43, %v284_v42 }
  0x6e   : > { %v301_v47 = vpack.c.bf16 %v293_v45, %v292_v44 }
  0x6f   : > { %677 = vmatpush3.bf16.msra.mxu0 %v800_v19  ;;  %713 = vmatpush3.bf16.msra.mxu1 %v800_v19 }
  0x70   : > { %678 = vmatprep.subr.bf16.mxu0 %v801_v26  ;;  %706 = vmatprep.subr.bf16.mxu1 %v801_v26 }
  0x73   : > { %679 = vmatpush3.bf16.msra.mxu0 %v801_v26  ;;  %714 = vmatpush3.bf16.msra.mxu1 %v801_v26 }
  0x74   : > { %680 = vmatprep.subr.bf16.mxu0 %v802_v27  ;;  %707 = vmatprep.subr.bf16.mxu1 %v802_v27 }
  0x77   : > { %681 = vmatpush3.bf16.msra.mxu0 %v802_v27  ;;  %715 = vmatpush3.bf16.msra.mxu1 %v802_v27 }
  0x78   : > { %682 = vmatprep.subr.bf16.mxu0 %v803_v28  ;;  %708 = vmatprep.subr.bf16.mxu1 %v803_v28 }
  0x7b   : > { %683 = vmatpush3.bf16.msra.mxu0 %v803_v28  ;;  %716 = vmatpush3.bf16.msra.mxu1 %v803_v28 }
  0x7c   : > { %684 = vmatprep.subr.bf16.mxu0 %v804_v29  ;;  %709 = vmatprep.subr.bf16.mxu1 %v804_v29 }
  0x7f   : > { %685 = vmatpush3.bf16.msra.mxu0 %v804_v29  ;;  %717 = vmatpush3.bf16.msra.mxu1 %v804_v29 }
  0x82   : > { %687 = vmatmul.mubr.bf16.vlgmr.msra.gmra.mrb[0].mxu0 %v295_v38  ;;  %695 = vmatmul.mubr.bf16.vlgmr.msra.gmra.mrb[0].mxu1 %v299_v39 }
  0x83   : > { %690 = vmatprep.mubr.bf16.mxu0 %v296_v40  ;;  %698 = vmatprep.mubr.bf16.mxu1 %v300_v41 }
  0x8a   : > { %691 = vmatmul.mubr.bf16.gmra.mrb[4].mxu0 %v297_v46  ;;  %699 = vmatmul.mubr.bf16.gmra.mrb[4].mxu1 %v301_v47 }
 0x155   : > { %v688_v49 = vpop.f32.mrb[0].mxu0  ;;  %v696_v50 = vpop.f32.mrb[0].mxu1 }
 0x156   : > { %v1164_v51 = vadd.f32 %v688_v49, %v638_v48  ;;  %v1166_v52 = vadd.f32 %v696_v50, %v638_v48  ;;  %v407_v53 = vpop.f32.mrb[1].mxu0  ;;  %v439_v54 = vpop.f32.mrb[1].mxu1 }
 0x157   : > { %v408_v55 = vadd.f32 %v638_v48, %v407_v53  ;;  %v1168_v56 = vadd.f32 %v638_v48, %v439_v54  ;;  %v689_v57 = vpop.f32.mrb[2].mxu0  ;;  %v697_v58 = vpop.f32.mrb[2].mxu1 }
 0x158   : > { %v472_v59 = vmax.f32 %v1164_v51, 0.0  ;;  %v480_v60 = vmax.f32 %v1166_v52, 0.0  ;;  %v419_v61 = vadd.f32 %v689_v57, %v638_v48  ;;  %v1172_v62 = vadd.f32 %v697_v58, %v638_v48  ;;  %v410_v63 = vpop.f32.mrb[3].mxu0  ;;  %v442_v0 = vpop.f32.mrb[3].mxu1  ;;  %511 = vst [vmem:[#allocation8 + $0x10] sm:$0xff] (!%p648_p5), %v1164_v51  ;;  %519 = vst [vmem:[#allocation8 + $0x50] sm:$0xff] (!%p648_p5), %v1166_v52 }
 0x159   : > { %v470_v1 = vmax.f32 %v408_v55, 0.0  ;;  %v478_v2 = vmax.f32 %v1168_v56, 0.0  ;;  %v411_v3 = vadd.f32 %v638_v48, %v410_v63  ;;  %v443_v4 = vadd.f32 %v638_v48, %v442_v0  ;;  %509 = vst [vmem:[#allocation8] sm:$0xff] (!%p648_p5), %v408_v55  ;;  %517 = vst [vmem:[#allocation8 + $0x40] sm:$0xff] (!%p648_p5), %v1168_v56 }
 0x15a   : > { %491 = vst [vmem:[%s1175_s30 + $0x10] sm:$0xff] %v472_v59  ;;  %499 = vst [vmem:[%s1175_s30 + $0x50] sm:$0xff] %v480_v60  ;;  %v473_v5 = vmax.f32 %v419_v61, 0.0  ;;  %v481_v6 = vmax.f32 %v1172_v62, 0.0 }
 0x15b   : > { %489 = vst [vmem:[%s1175_s30] sm:$0xff] %v470_v1  ;;  %497 = vst [vmem:[%s1175_s30 + $0x40] sm:$0xff] %v478_v2  ;;  %v471_v7 = vmax.f32 %v411_v3, 0.0  ;;  %v479_v8 = vmax.f32 %v443_v4, 0.0 }
 0x15c   : > { %492 = vst [vmem:[%s1175_s30 + $0x18] sm:$0xff] %v473_v5  ;;  %500 = vst [vmem:[%s1175_s30 + $0x58] sm:$0xff] %v481_v6 }
 0x15d   : > { %490 = vst [vmem:[%s1175_s30 + $0x8] sm:$0xff] %v471_v7  ;;  %498 = vst [vmem:[%s1175_s30 + $0x48] sm:$0xff] %v479_v8  ;;  %v692_v9 = vpop.f32.mrb[4].mxu0  ;;  %v700_v10 = vpop.f32.mrb[4].mxu1 }
 0x15e   : > { %v432_v11 = vadd.f32 %v692_v9, %v638_v48  ;;  %v464_v12 = vadd.f32 %v700_v10, %v638_v48  ;;  %v423_v13 = vpop.f32.mrb[5].mxu0  ;;  %v455_v14 = vpop.f32.mrb[5].mxu1  ;;  %510 = vst [vmem:[#allocation8 + $0x8] sm:$0xff] (!%p648_p5), %v411_v3  ;;  %512 = vst [vmem:[#allocation8 + $0x18] sm:$0xff] (!%p648_p5), %v419_v61 }
 0x15f   : > { %v424_v15 = vadd.f32 %v638_v48, %v423_v13  ;;  %v456_v16 = vadd.f32 %v638_v48, %v455_v14  ;;  %v693_v17 = vpop.f32.mrb[6].mxu0  ;;  %v701_v18 = vpop.f32.mrb[6].mxu1  ;;  %508 = sbr.rel (%p648_p5) target bundleno = 360 (0x168), region = 48  ;;  %518 = vst [vmem:[#allocation8 + $0x48] sm:$0xff] (!%p648_p5), %v443_v4  ;;  %520 = vst [vmem:[#allocation8 + $0x58] sm:$0xff] (!%p648_p5), %v1172_v62 }
 0x160   : > { %v476_v19 = vmax.f32 %v432_v11, 0.0  ;;  %v484_v20 = vmax.f32 %v464_v12, 0.0  ;;  %v435_v21 = vadd.f32 %v693_v17, %v638_v48  ;;  %v467_v22 = vadd.f32 %v701_v18, %v638_v48  ;;  %v426_v23 = vpop.f32.mrb[7].mxu0  ;;  %v458_v24 = vpop.f32.mrb[7].mxu1  ;;  %515 = vst [vmem:[#allocation8 + $0x30] sm:$0xff] (!%p648_p5), %v432_v11  ;;  %523 = vst [vmem:[#allocation8 + $0x70] sm:$0xff] (!%p648_p5), %v464_v12 }
 0x161   : > { %v474_v25 = vmax.f32 %v424_v15, 0.0  ;;  %v482_v26 = vmax.f32 %v456_v16, 0.0  ;;  %v427_v27 = vadd.f32 %v638_v48, %v426_v23  ;;  %v459_v28 = vadd.f32 %v638_v48, %v458_v24  ;;  %513 = vst [vmem:[#allocation8 + $0x20] sm:$0xff] (!%p648_p5), %v424_v15  ;;  %521 = vst [vmem:[#allocation8 + $0x60] sm:$0xff] (!%p648_p5), %v456_v16 }
 0x162   : > { %495 = vst [vmem:[%s1175_s30 + $0x30] sm:$0xff] %v476_v19  ;;  %503 = vst [vmem:[%s1175_s30 + $0x70] sm:$0xff] %v484_v20  ;;  %v477_v29 = vmax.f32 %v435_v21, 0.0  ;;  %v485_v30 = vmax.f32 %v467_v22, 0.0 }
 0x163   : > { %493 = vst [vmem:[%s1175_s30 + $0x20] sm:$0xff] %v474_v25  ;;  %501 = vst [vmem:[%s1175_s30 + $0x60] sm:$0xff] %v482_v26  ;;  %v475_v31 = vmax.f32 %v427_v27, 0.0  ;;  %v483_v32 = vmax.f32 %v459_v28, 0.0 }
 0x164   : > { %496 = vst [vmem:[%s1175_s30 + $0x38] sm:$0xff] %v477_v29  ;;  %504 = vst [vmem:[%s1175_s30 + $0x78] sm:$0xff] %v485_v30 }
 0x165   : > { %494 = vst [vmem:[%s1175_s30 + $0x28] sm:$0xff] %v475_v31  ;;  %502 = vst [vmem:[%s1175_s30 + $0x68] sm:$0xff] %v483_v32 }
 0x166   : > { %514 = vst [vmem:[#allocation8 + $0x28] sm:$0xff] %v427_v27  ;;  %516 = vst [vmem:[#allocation8 + $0x38] sm:$0xff] %v435_v21 }
 0x167   : > { %522 = vst [vmem:[#allocation8 + $0x68] sm:$0xff] %v459_v28  ;;  %524 = vst [vmem:[#allocation8 + $0x78] sm:$0xff] %v467_v22 }
 0x168 PF: > { %p1201_p8 = scmp.eq.s32.totalorder %s625_s18, 3  ;;  %s955_s7 = smov [#allocation8]  }
 0x169   : > { %s534_s8 = sshll.u32 %s955_s7, 4  ;;  %s535_s8 = int_to_ptr.vmem [resolvable:$true] %s534_s8 }
 0x16a   : > { %s863_s9 = scalar_lea.vmem %s535_s8, 2048  ;;  %p870_p13 = scmp.lt.s32.totalorder %s535_s8, %s535_s8 }
 0x16b   : > { %p864_p9 = scmp.ne.s32.totalorder %s535_s8, %s863_s9  ;;  %p871_p2 = scmp.lt.s32.totalorder %s863_s9, %s863_s9 }
 0x16d   : > { %p865_p10 = pnand %p864_p9, %p1201_p8  ;;  %p872_p3 = por %p871_p2, %p870_p13 }
 0x16f   : > { %p866_p11 = pneg %p865_p10 }
 0x171   : > { %p873_p12 = pnand %p872_p3, %p866_p11 }
 0x173   : > { %876 = shalt.err (!%p873_p12)
}
 0x174   : > { %s877_s18 = scalar_lea.hbm %s1248_s3, 2048 }
 0x175   : > { %p878_p0 = scmp.ne.s32.totalorder %s1248_s3, %s877_s18  ;;  %p883_p4 = scmp.lt.u32.totalorder %s877_s18, %s1248_s3 }
 0x177   : > { %p879_p6 = pnand %p878_p0, %p1201_p8 }
 0x179   : > { %p880_p7 = pneg %p879_p6 }
 0x17b   : > { %p885_p1 = pnand %p883_p4, %p880_p7 }
 0x17d   : > { %888 = shalt.err (!%p885_p1)
}
 0x17e   : > { %s956_s5 = smov 128   ;;  %s957_s6 = smov 8  }
 0x17f   : > { %725 = dma.vmem_to_hbm [thread:$0]  (%p1201_p8), %s535_s8, 2048, %s1248_s3, [#allocation5], %s956_s5, %s956_s5, %s957_s6  }
 0x180   : > { %922 = dma.done.wait (%p1201_p8), [#allocation5], 2048  }
 0x181   : > { %924 = vsyncadd (%p1201_p8), [#allocation5], 4294965248 }
 0x182 PF: > { %s18_s17 = sadd.s32 1, %s947_s17   ;;  %s1262_s12 = smov %s931_s13 }
 0x183   : > { %p15_p5 = scmp.ge.s32.totalorder %s18_s17, 6   ;;  %s1263_s13 = smov %s935_s14 }
 0x184   : > { %s1264_s14 = smov %s1063_s28  ;;  %s1265_s15 = smov %s943_s16 }
 0x185   : > { %s1266_s16 = smov %s1268_s25  ;;  %17 = sbr.rel (!%p15_p5) target bundleno = 6 (0x6), region = 89 }
 0x18c   :  { %550 = vsyncpa [#allocation4], 1 }
 0x18d   :  { %552 = vsyncpa [#allocation4 + $0x1], 1 }
 0x18e   :  { %553 = vsyncpa [#allocation7], 1 }
 0x18f   :  { %555 = vsyncpa [#allocation7 + $0x1], 1 }
 0x190   :  { %556 = vsyncpa [#allocation5], 1 }
 0x191   :  { %558 = vsyncpa [#allocation5 + $0x1], 1 }

</bundles_post_ra>
